<compile_context>
chip_gen: v7x
topology: tpu7x:2x2x1
jax: 0.10.0
libtpu: 0.0.40
codegen_flags: <defaults>
</compile_context>

<pallas_src>
import jax
import jax.numpy as jnp
from jax import lax
from jax.experimental import pallas as pl
from jax.experimental.pallas import tpu as pltpu


# Lane widths tried for the free lane-dense reshape (all multiples of 128).
_LANE_CHOICES = (512, 384, 256, 128)
# Below this many bytes of f32 working set the whole problem is one block and
# the kernel reduces it straight to scalars (no inner loop, no streaming).
_SMALL_F32_BYTES = 512 * 1024


def _chip_config():
    """-> (TensorCores behind one device, per-step input-block byte budget)."""
    try:
        kind = jax.devices()[0].device_kind.lower()
    except Exception:  # pragma: no cover
        kind = ""
    # v4 / v5p / v7x expose two TensorCores behind one device ("megacore");
    # a leading "parallel" grid axis shards work across them.  v5e / v6e are
    # single-TensorCore chips.
    cores = 2 if any(tag in kind for tag in ("v4", "v5p", "v7")) else 1
    # v5e's scoped-VMEM default is only 16 MiB -> keep the per-step input
    # footprint (both arrays) at 4 MiB there (x2 double buffering = 8 MiB).
    # Newer chips (32 MiB scoped default) get 8 MiB blocks.
    small_vmem = ("v5e" in kind) or ("v5 lite" in kind) or (kind == "")
    return cores, (4 << 20) if small_vmem else (8 << 20)


def _choose_view(shape):
    """Pick a free (contiguous-reshape) 2-D view of the flat (T*B*ny) data."""
    t, b, ny = shape
    n = t * b * ny
    for c in _LANE_CHOICES:          # lane-dense view when the size allows it
        if n % c == 0:
            return n // c, c
    return t, b * ny                 # natural row view (last dim = full extent)


def _small_kernel(rows, lanes, ny):
    """Whole-array-in-one-block kernel: reduce straight to two scalars."""

    def kernel(p_ref, t_ref, sse_ref, cnt_ref):
        p = p_ref[...].astype(jnp.float32)
        t = t_ref[...].astype(jnp.float32)
        m = t == t                                     # False on NaN targets
        if ny > 1:                                     # keep only channel 0
            lane = lax.broadcasted_iota(jnp.int32, (rows, lanes), 1)
            if lanes % ny == 0:
                m &= (lane % ny) == 0
            else:
                row = lax.broadcasted_iota(jnp.int32, (rows, lanes), 0)
                m &= ((row * lanes + lane) % ny) == 0
        d = jnp.where(m, p - t, jnp.float32(0.0))
        sse_ref[...] = jnp.sum(d * d, keepdims=True)
        cnt_ref[...] = jnp.sum(m.astype(jnp.float32), keepdims=True)

    return kernel


def _streaming_kernel(total_rows, lanes, ny, tile_rows, rg, per_core):
    """Row-block streaming kernel with in-register row-group accumulation."""
    groups = tile_rows // rg
    chan_by_lane = (ny > 1) and (lanes % ny == 0)
    chan_general = (ny > 1) and not chan_by_lane

    def kernel(p_ref, t_ref, sse_ref, cnt_ref, acc_sse, acc_cnt):
        step = pl.program_id(1)

        @pl.when(step == 0)
        def _():
            acc_sse[...] = jnp.zeros_like(acc_sse)
            acc_cnt[...] = jnp.zeros_like(acc_cnt)

        # Logical block id.  The input index_map clamps, so logical blocks past
        # the end re-read the last real block; `rows_left` masks them entirely.
        block = pl.program_id(0) * per_core + step
        row0 = block * tile_rows
        rows_left = total_rows - row0          # rows of this block with real data

        row_iota = lax.broadcasted_iota(jnp.int32, (rg, lanes), 0)
        if chan_by_lane:
            lane_iota = lax.broadcasted_iota(jnp.int32, (rg, lanes), 1)
            chan_ok = (lane_iota % ny) == 0                # hoisted, loop-invariant
        elif chan_general:
            lane_iota = lax.broadcasted_iota(jnp.int32, (rg, lanes), 1)
            local_off = row_iota * lanes + lane_iota       # hoisted

        zero = jnp.zeros((rg, lanes), jnp.float32)

        def body(g, carry):
            a_sse, a_cnt = carry
            r = pl.multiple_of(g * rg, rg)
            # Native-dtype loads, f32 compute (v5e has no bf16 VALU anyway).
            p = p_ref[pl.ds(r, rg), :].astype(jnp.float32)
            t = t_ref[pl.ds(r, rg), :].astype(jnp.float32)
            m = (t == t) & (row_iota < rows_left - g * rg)
            if chan_by_lane:
                m &= chan_ok
            elif chan_general:
                m &= ((row0 + g * rg) * lanes + local_off) % ny == 0
            d = jnp.where(m, p - t, jnp.float32(0.0))
            return a_sse + d * d, a_cnt + m.astype(jnp.float32)

        part_sse, part_cnt = lax.fori_loop(0, groups, body, (zero, zero), unroll=4)
        acc_sse[...] += part_sse
        acc_cnt[...] += part_cnt

        @pl.when(step == pl.num_programs(1) - 1)
        def _():
            # Finish the cross-lane/sublane reduce in-kernel (XLU) and emit
            # just two scalars per core -- no separate XLA reduction kernel.
            sse_ref[...] = jnp.sum(acc_sse[...], keepdims=True)
            cnt_ref[...] = jnp.sum(acc_cnt[...], keepdims=True)

    return kernel


def _masked_sse_and_count(output, target):
    """One fused pass over the raw arrays -> (masked channel-0 SSE, valid count)."""
    ny = output.shape[2]
    total_rows, lanes = _choose_view(output.shape)
    p2 = output.reshape(total_rows, lanes)   # free: contiguous reshape, no copy
    t2 = target.reshape(total_rows, lanes)

    lanes_pad = ((lanes + 127) // 128) * 128
    p_item = jnp.dtype(output.dtype).itemsize
    t_item = jnp.dtype(target.dtype).itemsize
    row_bytes = lanes_pad * (p_item + t_item)          # VMEM bytes/row, both inputs
    # Native sublane tile granularity: f32 -> 8 rows, bf16 -> 16, int8 -> 32.
    rg = max(8, 32 // max(1, min(p_item, t_item)))

    cores, tile_budget = _chip_config()

    small = (total_rows * lanes_pad * 4 <= _SMALL_F32_BYTES) or (total_rows < rg)
    if small:
        tile_rows, blocks = total_rows, 1
    else:
        budget_rows = max(rg, (tile_budget // row_bytes) // rg * rg)
        tile_rows = min(budget_rows, (total_rows // rg) * rg)
        blocks = pl.cdiv(total_rows, tile_rows)

    cores = max(1, min(cores, blocks))
    per_core = pl.cdiv(blocks, cores)

    def in_map(c, i, _last=blocks - 1):
        return jnp.minimum(c * per_core + i, _last), 0

    scalar_shape = jax.ShapeDtypeStruct((cores, 1, 1), jnp.float32)
    scalar_spec = pl.BlockSpec((None, 1, 1), lambda c, i: (c, 0, 0))

    if small:
        kernel = _small_kernel(total_rows, lanes, ny)
        scratch = []
    else:
        kernel = _streaming_kernel(total_rows, lanes, ny, tile_rows, rg, per_core)
        scratch = [pltpu.VMEM((rg, lanes), jnp.float32),
                   pltpu.VMEM((rg, lanes), jnp.float32)]

    sse_parts, cnt_parts = pl.pallas_call(
        kernel,
        out_shape=(scalar_shape, scalar_shape),
        grid=(cores, per_core),
        in_specs=[pl.BlockSpec((tile_rows, lanes), in_map),
                  pl.BlockSpec((tile_rows, lanes), in_map)],
        out_specs=(scalar_spec, scalar_spec),
        scratch_shapes=scratch,
        compiler_params=pltpu.CompilerParams(
            dimension_semantics=("parallel", "arbitrary")),
    )(p2, t2)
    # Tiny epilogue: combine the (<= 2) per-core scalar partials.
    return jnp.sum(sse_parts), jnp.sum(cnt_parts)


@jax.jit
def rmse_loss(output, target):
    """Pallas-backed equivalent of RmseLoss().forward(output, target)."""
    ny = target.shape[2]
    if ny == 0:
        return jnp.float32(0.0)
    if output.shape != target.shape:
        # TODO(synk): mismatched output/target channel counts -- fall back to an
        # XLA channel-0 slice (extra copy); the fused in-kernel stride mask
        # needs identical element layouts for the two arrays.
        output = output[:, :, :1]
        target = target[:, :, :1]
    # NOTE: the original module indexes channel 0 on every loop iteration (its
    # loop variable k is never used), so the loss is ny identical channel-0
    # RMSE terms summed.  Reproduced exactly -- do not "fix" to per-channel.
    sse, cnt = _masked_sse_and_count(output, target)
    return jnp.float32(ny) * jnp.sqrt(sse / cnt)


def _reference_loss(output, target):
    ny = target.shape[2]
    p0 = output[:, :, 0].astype(jnp.float32)
    t0 = target[:, :, 0].astype(jnp.float32)
    mask = ~jnp.isnan(t0)
    diff = jnp.where(mask, p0 - t0, 0.0)
    return ny * jnp.sqrt(jnp.sum(diff * diff) / jnp.sum(mask.astype(jnp.float32)))


if __name__ == "__main__":
    key = jax.random.PRNGKey(0)

    # --- small path (single block, whole-array reduce) ----------------------
    T, B, NY = 16, 8, 4
    k1, k2 = jax.random.split(key)
    output = jax.random.normal(k1, (T, B, NY), dtype=jnp.float32)
    target = jax.random.normal(k2, (T, B, NY), dtype=jnp.float32)
    target = target.at[0, 0, 0].set(jnp.nan)   # NaNs in channel 0 -> masked out
    target = target.at[5, 3, 0].set(jnp.nan)
    target = target.at[2, 1, 2].set(jnp.nan)   # NaN off channel 0 -> never read

    loss = rmse_loss(output, target)
    jax.block_until_ready(loss)
    ref = _reference_loss(output, target)
    assert jnp.allclose(loss, ref, rtol=1e-5, atol=1e-6), (loss, ref)

    # --- streaming path (multi-block grid, partial last block) --------------
    T2, B2, NY2 = 257, 128, 4
    k3, k4 = jax.random.split(k1)
    output2 = jax.random.normal(k3, (T2, B2, NY2), dtype=jnp.float32)
    target2 = jax.random.normal(k4, (T2, B2, NY2), dtype=jnp.float32)
    target2 = target2.at[0, 0, 0].set(jnp.nan)
    target2 = target2.at[100, 7, 0].set(jnp.nan)
    target2 = target2.at[256, 127, 0].set(jnp.nan)
    target2 = target2.at[10, 10, 3].set(jnp.nan)

    loss2 = rmse_loss(output2, target2)
    jax.block_until_ready(loss2)
    ref2 = _reference_loss(output2, target2)
    assert jnp.allclose(loss2, ref2, rtol=1e-4, atol=1e-6), (loss2, ref2)

    print("KERNEL_OK")
</pallas_src>

<mosaic_0001>
module attributes {stable_mosaic.version = 11 : i64} {
  func.func @kernel(%arg0: i32, %arg1: i32, %arg2: memref<1x512xf32, #tpu.memory_space<vmem>>, %arg3: memref<1x512xf32, #tpu.memory_space<vmem>>, %arg4: memref<1x1x1xf32, #tpu.memory_space<vmem>>, %arg5: memref<1x1x1xf32, #tpu.memory_space<vmem>>) attributes {dimension_semantics = [#tpu.dimension_semantics<parallel>, #tpu.dimension_semantics<arbitrary>], iteration_bounds = array<i64: 1, 1>, scalar_prefetch = 0 : i64, scratch_operands = 0 : i64, tpu.core_type = #tpu.core_type<tc>, window_params = [{transform_indices = @transform_0, window_bounds = array<i64: 1, 512>}, {transform_indices = @transform_1, window_bounds = array<i64: 1, 512>}, {transform_indices = @transform_2, window_bounds = array<i64: 1, 1, 1>}, {transform_indices = @transform_3, window_bounds = array<i64: 1, 1, 1>}]} {
    %c0 = arith.constant 0 : index
    %c0_0 = arith.constant 0 : index
    %0 = vector.load %arg2[%c0, %c0_0] : memref<1x512xf32, #tpu.memory_space<vmem>>, vector<1x512xf32>
    %c0_1 = arith.constant 0 : index
    %c0_2 = arith.constant 0 : index
    %1 = vector.load %arg3[%c0_1, %c0_2] : memref<1x512xf32, #tpu.memory_space<vmem>>, vector<1x512xf32>
    %2 = arith.cmpf oeq, %1, %1 : vector<1x512xf32>
    %3 = tpu.iota {dimensions = array<i32: 1>} : vector<1x512xi32>
    %c4_i32 = arith.constant 4 : i32
    %c0_i32 = arith.constant 0 : i32
    %4 = arith.cmpi eq, %c4_i32, %c0_i32 : i32
    %c1_i32 = arith.constant 1 : i32
    %5 = arith.select %4, %c1_i32, %c4_i32 : i32
    %6 = vector.broadcast %5 : i32 to vector<1x512xi32>
    %7 = arith.remsi %3, %6 : vector<1x512xi32>
    %c0_i32_3 = arith.constant 0 : i32
    %8 = vector.broadcast %c0_i32_3 : i32 to vector<1x512xi32>
    %9 = arith.cmpi ne, %7, %8 : vector<1x512xi32>
    %c0_i32_4 = arith.constant 0 : i32
    %10 = vector.broadcast %c0_i32_4 : i32 to vector<1x512xi32>
    %11 = arith.cmpi slt, %7, %10 : vector<1x512xi32>
    %c0_i32_5 = arith.constant 0 : i32
    %12 = arith.cmpi slt, %5, %c0_i32_5 : i32
    %13 = vector.broadcast %12 : i1 to vector<1x512xi1>
    %14 = vector.broadcast %13 : vector<1x512xi1> to vector<1x512xi1>
    %15 = arith.xori %11, %14 : vector<1x512xi1>
    %16 = arith.andi %15, %9 : vector<1x512xi1>
    %17 = vector.broadcast %5 : i32 to vector<1x512xi32>
    %18 = arith.addi %7, %17 : vector<1x512xi32>
    %19 = arith.select %16, %18, %7 : vector<1x512xi1>, vector<1x512xi32>
    %c0_i32_6 = arith.constant 0 : i32
    %20 = vector.broadcast %c0_i32_6 : i32 to vector<1x512xi32>
    %21 = arith.cmpi eq, %19, %20 : vector<1x512xi32>
    %22 = arith.andi %2, %21 : vector<1x512xi1>
    %23 = arith.subf %0, %1 : vector<1x512xf32>
    %cst = arith.constant 0.000000e+00 : f32
    %24 = vector.broadcast %cst : f32 to vector<1x512xf32>
    %25 = arith.select %22, %23, %24 : vector<1x512xi1>, vector<1x512xf32>
    %26 = arith.mulf %25, %25 : vector<1x512xf32>
    %27 = vector.shape_cast %26 : vector<1x512xf32> to vector<1x1x512xf32>
    %cst_7 = arith.constant dense<0.000000e+00> : vector<1xf32>
    %28 = vector.multi_reduction <add>, %27, %cst_7 [1, 2] : vector<1x1x512xf32> to vector<1xf32>
    %29 = vector.shape_cast %28 : vector<1xf32> to vector<1x1x1xf32>
    %30 = vector.extract %29[0, 0, 0] : f32 from vector<1x1x1xf32>
    %31 = vector.broadcast %30 : f32 to vector<1x1xf32>
    %c0_8 = arith.constant 0 : index
    %c0_9 = arith.constant 0 : index
    %c0_10 = arith.constant 0 : index
    %32 = vector.load %arg4[%c0_8, %c0_9, %c0_10] : memref<1x1x1xf32, #tpu.memory_space<vmem>>, vector<1x1x1xf32>
    %33 = vector.shape_cast %32 : vector<1x1x1xf32> to vector<1x1xf32>
    %34 = vector.shape_cast %31 : vector<1x1xf32> to vector<1x1x1xf32>
    tpu.vector_store %arg4[%c0_8, %c0_9, %c0_10], %34 {strides = array<i32>} : memref<1x1x1xf32, #tpu.memory_space<vmem>>, vector<1x1x1xf32>,
    %35 = arith.extui %22 : vector<1x512xi1> to vector<1x512xi32>
    %36 = arith.sitofp %35 : vector<1x512xi32> to vector<1x512xf32>
    %37 = vector.shape_cast %36 : vector<1x512xf32> to vector<1x1x512xf32>
    %cst_11 = arith.constant dense<0.000000e+00> : vector<1xf32>
    %38 = vector.multi_reduction <add>, %37, %cst_11 [1, 2] : vector<1x1x512xf32> to vector<1xf32>
    %39 = vector.shape_cast %38 : vector<1xf32> to vector<1x1x1xf32>
    %40 = vector.extract %39[0, 0, 0] : f32 from vector<1x1x1xf32>
    %41 = vector.broadcast %40 : f32 to vector<1x1xf32>
    %c0_12 = arith.constant 0 : index
    %c0_13 = arith.constant 0 : index
    %c0_14 = arith.constant 0 : index
    %42 = vector.load %arg5[%c0_12, %c0_13, %c0_14] : memref<1x1x1xf32, #tpu.memory_space<vmem>>, vector<1x1x1xf32>
    %43 = vector.shape_cast %42 : vector<1x1x1xf32> to vector<1x1xf32>
    %44 = vector.shape_cast %41 : vector<1x1xf32> to vector<1x1x1xf32>
    tpu.vector_store %arg5[%c0_12, %c0_13, %c0_14], %44 {strides = array<i32>} : memref<1x1x1xf32, #tpu.memory_space<vmem>>, vector<1x1x1xf32>,
    return
  }
  func.func @transform_0(%arg0: i32, %arg1: i32) -> (i32, i32) {
    %c1_i32 = arith.constant 1 : i32
    %0 = arith.muli %arg0, %c1_i32 : i32
    %1 = arith.addi %0, %arg1 : i32
    %c0_i32 = arith.constant 0 : i32
    %2 = arith.minsi %1, %c0_i32 : i32
    %c0_i32_0 = arith.constant 0 : i32
    %c0_i32_1 = arith.constant 0 : i32
    return %2, %c0_i32_0 : i32, i32
  }
  func.func @transform_1(%arg0: i32, %arg1: i32) -> (i32, i32) {
    %c1_i32 = arith.constant 1 : i32
    %0 = arith.muli %arg0, %c1_i32 : i32
    %1 = arith.addi %0, %arg1 : i32
    %c0_i32 = arith.constant 0 : i32
    %2 = arith.minsi %1, %c0_i32 : i32
    %c0_i32_0 = arith.constant 0 : i32
    %c0_i32_1 = arith.constant 0 : i32
    return %2, %c0_i32_0 : i32, i32
  }
  func.func @transform_2(%arg0: i32, %arg1: i32) -> (i32, i32, i32) {
    %c0_i32 = arith.constant 0 : i32
    %c0_i32_0 = arith.constant 0 : i32
    %c0_i32_1 = arith.constant 0 : i32
    return %arg0, %c0_i32, %c0_i32_0 : i32, i32, i32
  }
  func.func @transform_3(%arg0: i32, %arg1: i32) -> (i32, i32, i32) {
    %c0_i32 = arith.constant 0 : i32
    %c0_i32_0 = arith.constant 0 : i32
    %c0_i32_1 = arith.constant 0 : i32
    return %arg0, %c0_i32, %c0_i32_0 : i32, i32, i32
  }
}

</mosaic_0001>

<bundles_post_ra>
// kernel: rmse_loss.1
= control target key start
LH: loop header
LB: loop body
LE: loop exit
PB: predicated region body
PF: predicated region fallthrough
CT: control target
= control target key end

     0   :  { %9 = vsyncpa [#allocation3], 0  ;;  %v72_v0 = vlaneseq  ;;  %s407_s0 = inlined_call_operand.vmem [shape: f32[1,512], index: 0, kind: input, shape index: {}]   ;;  %s408_s1 = inlined_call_operand.vmem [shape: f32[1,512], index: 1, kind: input, shape index: {}]   ;;  %s409_s2 = inlined_call_operand.hbm [shape: f32[1,1,1], index: 2, kind: output, shape index: {0}]   ;;  %s410_s3 = inlined_call_operand.hbm [shape: f32[1,1,1], index: 3, kind: output, shape index: {1}]  }
   0x1   :  { %10 = vsyncpa [#allocation5], 0  ;;  %v342_v2 = vmov 1966171168   ;;  %v343_v13 = vmov 0   ;;  %v344_v33 = vmov 0.0  }
   0x2   :  { %v73_v1 = vand.u32 127, %v72_v0  ;;  %v136_v3 = vunpack.c.l.s4 %v342_v2  ;;  %v139_v4 = vshrl.u32 %v72_v0, 7  ;;  %v69_v23 = vld [vmem:[%s407_s0] sm:$0xf]  ;;  %vm183_vm7 = vcmask 1040384   ;;  %s345_s0 = smov [#allocation2]  }
   0x3   :  { %v70_v24 = vld [vmem:[%s408_s1] sm:$0xf]  ;;  %s250_s1 = sshll.u32 %s345_s0, 4  ;;  %vm201_vm8 = vcmask 0   ;;  %s346_s17 = smov [#allocation4]   ;;  %s251_s1 = int_to_ptr.vmem [resolvable:$true] %s250_s1 }
   0x4   :  { %v74_v5 = vadd.s32 128, %v73_v1  ;;  %v75_v6 = vadd.s32 256, %v73_v1  ;;  %v76_v7 = vadd.s32 384, %v73_v1  ;;  %v81_v8 = vand.u32 3, %v73_v1  ;;  %s260_s18 = sshll.u32 %s346_s17, 4  ;;  %s294_s19 = scalar_lea.vmem %s251_s1, 16  ;;  %s261_s18 = int_to_ptr.vmem [resolvable:$true] %s260_s18 }
   0x5   :  { %v137_v9 = vunpack.c.0.s8 %v136_v3  ;;  %vm71_vm4 = vcmp.eq.f32.partialorder %v70_v24, %v70_v24  ;;  %v159_v27 = vsub.f32 %v69_v23, %v70_v24  ;;  %v165_v28 = vsub.s32 0, %v139_v4  ;;  %p295_p0 = scmp.ne.s32.totalorder %s251_s1, %s294_s19  ;;  %s298_s20 = scalar_lea.vmem %s251_s1, 32 }
   0x6   :  { %v88_v10 = vand.u32 3, %v74_v5  ;;  %v95_v11 = vand.u32 3, %v75_v6  ;;  %v102_v12 = vand.u32 3, %v76_v7  ;;  %vm125_vm0 = vcmp.eq.s32.totalorder %v81_v8, 0  ;;  %p299_p1 = scmp.lt.s32.totalorder %s251_s1, %s251_s1  ;;  %p300_p2 = scmp.lt.s32.totalorder %s298_s20, %s294_s19 }
   0x7   :  { %v129_v14 = vsel %vm125_vm0, 1, %v343_v13  ;;  %v140_v15 = vsub.s32 %v137_v9, %v139_v4  ;;  %v169_v29 = vsub.s32 1, %v139_v4  ;;  %v173_v30 = vsub.s32 2, %v139_v4 }
   0x8   :  { %vm126_vm1 = vcmp.eq.s32.totalorder %v88_v10, 0  ;;  %vm127_vm2 = vcmp.eq.s32.totalorder %v95_v11, 0  ;;  %vm128_vm3 = vcmp.eq.s32.totalorder %v102_v12, 0  ;;  %v177_v31 = vsub.s32 3, %v139_v4  ;;  %p301_p3 = por %p300_p2, %p299_p1 }
   0x9   :  { %v130_v16 = vsel %vm126_vm1, 1, %v343_v13  ;;  %v131_v17 = vsel %vm127_vm2, 1, %v343_v13  ;;  %v132_v18 = vsel %vm128_vm3, 1, %v343_v13 }
   0xa   :  { %v133_v19 = vcombine.low %v129_v14, %v130_v16  ;;  %v134_v20 = vcombine.low %v131_v17, %v132_v18  ;;  %p302_p4 = pnand %p301_p3, %p295_p0 }
   0xc   :  { %v141_v21 = vrot.slane %v133_v19, %v140_v15  ;;  %v148_v22 = vrot.slane %v134_v20, %v140_v15 }
   0xe   :  { %v149_v25 = vcombine.low %v141_v21, %v148_v22 }
  0x10   :  { %v156_v26 = vrot.slane %v149_v25, %v140_v15 }
  0x12   :  { %vm157_vm5 = vcmp.ne.s32.totalorder %v156_v26, 0 }
  0x13   :  { %vm158_vm6 = vmand %vm71_vm4, %vm157_vm5 }
  0x14   :  { %v160_v32 = vsel %vm158_vm6, %v159_v27, 0.0  ;;  %v284_v34 = vsel %vm158_vm6, 1.0, %v344_v33 }
  0x15   :  { %v161_v35 = vmul.f32 %v160_v32, %v160_v32  ;;  %v209_v36 = vrot.slane %v284_v34, %v165_v28  ;;  %v213_v37 = vrot.slane %v284_v34, %v169_v29  ;;  %v217_v38 = vrot.slane %v284_v34, %v173_v30 }
  0x16   :  { %v221_v43 = vrot.slane %v284_v34, %v177_v31 }
  0x17   :  { %v166_v39 = vrot.slane %v161_v35, %v165_v28  ;;  %v170_v40 = vrot.slane %v161_v35, %v169_v29  ;;  %v174_v41 = vrot.slane %v161_v35, %v173_v30  ;;  %v178_v42 = vrot.slane %v161_v35, %v177_v31 }
  0x18   :  { %v226_v44 = vsel %vm183_vm7, %v209_v36, 0.0  ;;  %v227_v45 = vsel %vm183_vm7, %v213_v37, 0.0  ;;  %v229_v49 = vsel %vm183_vm7, %v217_v38, 0.0  ;;  %v231_v55 = vsel %vm183_vm7, %v221_v43, 0.0 }
  0x19   :  { %v184_v46 = vsel %vm183_vm7, %v166_v39, 0.0  ;;  %v185_v47 = vsel %vm183_vm7, %v170_v40, 0.0  ;;  %v187_v48 = vsel %vm183_vm7, %v174_v41, 0.0  ;;  %v228_v51 = vadd.f32 %v227_v45, %v226_v44 }
  0x1a   :  { %v186_v50 = vadd.f32 %v185_v47, %v184_v46  ;;  %v189_v52 = vsel %vm183_vm7, %v178_v42, 0.0 }
  0x1b   :  { %v230_v54 = vadd.f32 %v229_v49, %v228_v51 }
  0x1c   :  { %v188_v53 = vadd.f32 %v187_v48, %v186_v50 }
  0x1d   :  { %v232_v57 = vadd.f32 %v231_v55, %v230_v54 }
  0x1e   :  { %v190_v56 = vadd.f32 %v189_v52, %v188_v53 }
  0x20   :  { %191 = vadd.xlane.f32.xlu0 %v190_v56 }
  0x24   :  { %233 = vadd.xlane.f32.xlu0 %v232_v57 }
  0xad   :  { %v192_v58 = vpop.xlane.xlu0 %191 }
  0xae   :  { %v193_v59 = vrot.slane %v192_v58, 4 }
  0xb0   :  { %v194_v60 = vadd.f32 %v193_v59, %v192_v58 }
  0xb1   :  { %v234_v61 = vpop.xlane.xlu0 %233 }
  0xb2   :  { %v195_v62 = vrot.slane %v194_v60, 2  ;;  %v235_v63 = vrot.slane %v234_v61, 4 }
  0xb4   :  { %v236_v0 = vadd.f32 %v235_v63, %v234_v61  ;;  %v196_v1 = vadd.f32 %v195_v62, %v194_v60 }
  0xb6   :  { %v237_v2 = vrot.slane %v236_v0, 2  ;;  %v197_v3 = vrot.slane %v196_v1, 1 }
  0xb8   :  { %v238_v4 = vadd.f32 %v237_v2, %v236_v0  ;;  %v198_v5 = vadd.f32 %v197_v3, %v196_v1 }
  0xba   :  { %285 = vpush %v198_v5  ;;  %v239_v6 = vrot.slane %v238_v4, 1 }
  0xbc   :  { %v240_v7 = vadd.f32 %v239_v6, %v238_v4 }
  0xbe   :  { %287 = vpush %v240_v7 }
  0xeb   :  { %s286_s16 = spop %285 }
  0xec   :  { %v200_v8 = vstv %s286_s16 }
  0xed   :  { %202 = vst.msk [vmem:[#allocation2] sm:$0x1] %vm201_vm8, %v200_v8 }
  0xee   :  { %305 = shalt.err (!%p302_p4)
}
  0xef   :  { %s306_s23 = scalar_lea.hbm %s409_s2, 16 }
  0xf0   :  { %p307_p5 = scmp.ne.s32.totalorder %s409_s2, %s306_s23  ;;  %p310_p6 = scmp.lt.u32.totalorder %s306_s23, %s409_s2 }
  0xf2   :  { %p312_p7 = pnand %p310_p6, %p307_p5 }
  0xf4   :  { %315 = shalt.err (!%p312_p7)
}
  0xf5   :  { %253 = dma.vmem_to_hbm [thread:$0]  %s251_s1, 16, %s409_s2, [#allocation3]  }
  0xf6   :  { %s288_s30 = spop %287  ;;  %s316_s4 = scalar_lea.vmem %s261_s18, 16 }
  0xf7   :  { %v242_v9 = vstv %s288_s30  ;;  %p317_p8 = scmp.ne.s32.totalorder %s261_s18, %s316_s4  ;;  %s320_s5 = scalar_lea.vmem %s261_s18, 32 }
  0xf8   :  { %243 = vst.msk [vmem:[#allocation4] sm:$0x1] %vm201_vm8, %v242_v9  ;;  %p321_p9 = scmp.lt.s32.totalorder %s261_s18, %s261_s18  ;;  %p322_p10 = scmp.lt.s32.totalorder %s320_s5, %s316_s4 }
  0xfa   :  { %p323_p11 = por %p322_p10, %p321_p9 }
  0xfc   :  { %p324_p12 = pnand %p323_p11, %p317_p8 }
  0xfe   :  { %327 = shalt.err (!%p324_p12)
}
  0xff   :  { %s328_s8 = scalar_lea.hbm %s410_s3, 16 }
 0x100   :  { %p329_p13 = scmp.ne.s32.totalorder %s410_s3, %s328_s8  ;;  %p332_p0 = scmp.lt.u32.totalorder %s328_s8, %s410_s3 }
 0x102   :  { %p334_p1 = pnand %p332_p0, %p329_p13 }
 0x104   :  { %337 = shalt.err (!%p334_p1)
}
 0x105   :  { %263 = dma.vmem_to_hbm [thread:$0]  %s261_s18, 16, %s410_s3, [#allocation5]  }
 0x106   :  { %338 = dma.done.wait [#allocation3], 16  }
 0x107   :  { %339 = vsyncadd [#allocation3], 4294967280 }
 0x108   :  { %340 = dma.done.wait [#allocation5], 16  }
 0x109   :  { %341 = vsyncadd [#allocation5], 4294967280 }
 0x10a   :  { %270 = vsyncpa [#allocation3], 1 }
 0x10b   :  { %271 = vsyncpa [#allocation5], 1 }

</bundles_post_ra>
